<compile_context>
chip_gen: v5e
topology: v5e:2x2
jax: 0.10.0
libtpu: 0.0.40
codegen_flags: <defaults>
</compile_context>

<pallas_src>
import functools

import jax
import jax.numpy as jnp
from jax import lax
from jax.experimental import pallas as pl
from jax.experimental.pallas import tpu as pltpu

_LANES = 512           # lane-dense slab width (multiple of 128)
_MAX_BLOCK_ROWS = 512  # (512, 512) f32 block = 1 MiB per pipeline buffer


def _mix32(x):
    """splitmix32 finalizer: uint32 -> well-mixed uint32 (pure VPU int ops)."""
    x = (x ^ (x >> 16)) * jnp.uint32(0x7FEB352D)
    x = (x ^ (x >> 15)) * jnp.uint32(0x846CA68B)
    return x ^ (x >> 16)


def _bits_to_unit_float(bits):
    """Top 23 random bits -> f32 in [1, 2) via mantissa bitcast (no itofp)."""
    mant = (bits >> 9) | jnp.uint32(0x3F800000)
    return lax.bitcast_convert_type(mant, jnp.float32)


def _gaussian_noise_kernel(seed_ref, x_ref, o_ref, *, variance):
    rows, cols = x_ref.shape
    half = cols // 2

    # Globally unique counter per (pair of output elements): blocks are
    # independent, so the grid can be marked "parallel".
    row = lax.broadcasted_iota(jnp.int32, (rows, half), 0)
    col = lax.broadcasted_iota(jnp.int32, (rows, half), 1)
    gidx = ((pl.program_id(0) * rows + row) * half + col).astype(jnp.uint32)

    seed = seed_ref[0].astype(jnp.uint32)
    k1 = _mix32(seed + jnp.uint32(0x9E3779B9))   # two independent stream keys
    k2 = _mix32(seed + jnp.uint32(0x3C6EF372))

    b1 = _mix32(gidx ^ k1)
    b2 = _mix32(gidx ^ k2)

    u1 = 2.0 - _bits_to_unit_float(b1)           # (0, 1]  -> safe for log
    u2 = _bits_to_unit_float(b2) - 1.0           # [0, 1)

    # Box-Muller, both branches: each (u1, u2) pair yields 2 standard normals.
    r = jnp.sqrt(-2.0 * jnp.log(u1))
    theta = jnp.float32(2.0 * jnp.pi) * u2
    z = jnp.concatenate([r * jnp.cos(theta), r * jnp.sin(theta)], axis=-1)

    x = x_ref[...].astype(jnp.float32)
    # Match PyTorch exactly: noise std == `variance` (randn * variance).
    o_ref[...] = (x + z * jnp.float32(variance)).astype(o_ref.dtype)


def gaussian_noise(x, seed, *, variance=0.01, training=True):
    """JAX/Pallas equivalent of GaussianNoise.forward."""
    if not training or x.size == 0:
        return x

    orig_shape = x.shape
    n = x.size

    pad = (-n) % _LANES
    flat = x.reshape(-1)
    if pad:
        # Slow path only when numel is not a multiple of 512.
        flat = jnp.pad(flat, (0, pad))
    rows = flat.shape[0] // _LANES
    x2d = flat.reshape(rows, _LANES)

    block_rows = rows if rows < _MAX_BLOCK_ROWS else _MAX_BLOCK_ROWS
    grid = (pl.cdiv(rows, block_rows),)

    seed_arr = jnp.asarray([seed], dtype=jnp.int32)
    kernel = functools.partial(_gaussian_noise_kernel, variance=float(variance))

    out2d = pl.pallas_call(
        kernel,
        out_shape=jax.ShapeDtypeStruct((rows, _LANES), x.dtype),
        grid_spec=pltpu.PrefetchScalarGridSpec(
            num_scalar_prefetch=1,
            grid=grid,
            in_specs=[pl.BlockSpec((block_rows, _LANES), lambda i, s: (i, 0))],
            out_specs=pl.BlockSpec((block_rows, _LANES), lambda i, s: (i, 0)),
        ),
        compiler_params=pltpu.CompilerParams(
            dimension_semantics=("parallel",),
            vmem_limit_bytes=32 * 1024 * 1024,
        ),
        cost_estimate=pl.CostEstimate(
            flops=30 * rows * _LANES,
            transcendentals=2 * rows * _LANES,
            bytes_accessed=2 * rows * _LANES * x.dtype.itemsize,
        ),
    )(seed_arr, x2d)

    out = out2d.reshape(-1)
    if pad:
        out = out[:n]
    return out.reshape(orig_shape)


if __name__ == "__main__":
    key = jax.random.PRNGKey(0)
    x = jax.random.normal(key, (2, 4, 16, 16), dtype=jnp.float32)

    variance = 0.01
    y = gaussian_noise(x, seed=1234, variance=variance, training=True)
    y = jax.block_until_ready(y)

    assert y.shape == x.shape and y.dtype == x.dtype
    noise = y - x
    # Noise should be small (std ~= variance), roughly centered, non-degenerate.
    assert float(jnp.max(jnp.abs(noise))) < 10.0 * variance
    assert float(jnp.std(noise)) > 0.1 * variance
    assert abs(float(jnp.mean(noise))) < 0.25 * variance

    # Eval mode is identity.
    y_eval = gaussian_noise(x, seed=1234, variance=variance, training=False)
    assert bool(jnp.all(y_eval == x))

    print("KERNEL_OK")
</pallas_src>

<mosaic_0001>
module attributes {stable_mosaic.version = 11 : i64} {
  func.func @_gaussian_noise_kernel(%arg0: i32, %arg1: memref<1xi32, #tpu.memory_space<smem>>, %arg2: memref<4x512xf32, #tpu.memory_space<vmem>>, %arg3: memref<4x512xf32, #tpu.memory_space<vmem>>) attributes {dimension_semantics = [#tpu.dimension_semantics<parallel>], iteration_bounds = array<i64: 1>, scalar_prefetch = 1 : i64, scratch_operands = 0 : i64, tpu.core_type = #tpu.core_type<tc>, window_params = [{transform_indices = @transform_0, window_bounds = array<i64: 4, 512>}, {transform_indices = @transform_1, window_bounds = array<i64: 4, 512>}]} {
    %0 = tpu.iota {dimensions = array<i32: 0>} : vector<4x256xi32>
    %1 = tpu.iota {dimensions = array<i32: 1>} : vector<4x256xi32>
    %c4_i32 = arith.constant 4 : i32
    %2 = arith.muli %arg0, %c4_i32 : i32
    %3 = vector.broadcast %2 : i32 to vector<4x256xi32>
    %4 = arith.addi %3, %0 : vector<4x256xi32>
    %c256_i32 = arith.constant 256 : i32
    %5 = vector.broadcast %c256_i32 : i32 to vector<4x256xi32>
    %6 = arith.muli %4, %5 : vector<4x256xi32>
    %7 = arith.addi %6, %1 : vector<4x256xi32>
    %c0 = arith.constant 0 : index
    %8 = memref.load %arg1[%c0] : memref<1xi32, #tpu.memory_space<smem>>
    %c-1640531527_i32 = arith.constant -1640531527 : i32
    %9 = arith.addi %8, %c-1640531527_i32 : i32
    %c16_i32 = arith.constant 16 : i32
    %10 = arith.shrui %9, %c16_i32 : i32
    %11 = arith.xori %9, %10 : i32
    %c2146121005_i32 = arith.constant 2146121005 : i32
    %12 = arith.muli %11, %c2146121005_i32 : i32
    %c15_i32 = arith.constant 15 : i32
    %13 = arith.shrui %12, %c15_i32 : i32
    %14 = arith.xori %12, %13 : i32
    %c-2073254261_i32 = arith.constant -2073254261 : i32
    %15 = arith.muli %14, %c-2073254261_i32 : i32
    %c16_i32_0 = arith.constant 16 : i32
    %16 = arith.shrui %15, %c16_i32_0 : i32
    %17 = arith.xori %15, %16 : i32
    %c1013904242_i32 = arith.constant 1013904242 : i32
    %18 = arith.addi %8, %c1013904242_i32 : i32
    %c16_i32_1 = arith.constant 16 : i32
    %19 = arith.shrui %18, %c16_i32_1 : i32
    %20 = arith.xori %18, %19 : i32
    %c2146121005_i32_2 = arith.constant 2146121005 : i32
    %21 = arith.muli %20, %c2146121005_i32_2 : i32
    %c15_i32_3 = arith.constant 15 : i32
    %22 = arith.shrui %21, %c15_i32_3 : i32
    %23 = arith.xori %21, %22 : i32
    %c-2073254261_i32_4 = arith.constant -2073254261 : i32
    %24 = arith.muli %23, %c-2073254261_i32_4 : i32
    %c16_i32_5 = arith.constant 16 : i32
    %25 = arith.shrui %24, %c16_i32_5 : i32
    %26 = arith.xori %24, %25 : i32
    %27 = vector.broadcast %17 : i32 to vector<4x256xi32>
    %28 = arith.xori %7, %27 : vector<4x256xi32>
    %c16_i32_6 = arith.constant 16 : i32
    %29 = vector.broadcast %c16_i32_6 : i32 to vector<4x256xi32>
    %30 = arith.shrui %28, %29 : vector<4x256xi32>
    %31 = arith.xori %28, %30 : vector<4x256xi32>
    %c2146121005_i32_7 = arith.constant 2146121005 : i32
    %32 = vector.broadcast %c2146121005_i32_7 : i32 to vector<4x256xi32>
    %33 = arith.muli %31, %32 : vector<4x256xi32>
    %c15_i32_8 = arith.constant 15 : i32
    %34 = vector.broadcast %c15_i32_8 : i32 to vector<4x256xi32>
    %35 = arith.shrui %33, %34 : vector<4x256xi32>
    %36 = arith.xori %33, %35 : vector<4x256xi32>
    %c-2073254261_i32_9 = arith.constant -2073254261 : i32
    %37 = vector.broadcast %c-2073254261_i32_9 : i32 to vector<4x256xi32>
    %38 = arith.muli %36, %37 : vector<4x256xi32>
    %c16_i32_10 = arith.constant 16 : i32
    %39 = vector.broadcast %c16_i32_10 : i32 to vector<4x256xi32>
    %40 = arith.shrui %38, %39 : vector<4x256xi32>
    %41 = arith.xori %38, %40 : vector<4x256xi32>
    %42 = vector.broadcast %26 : i32 to vector<4x256xi32>
    %43 = arith.xori %7, %42 : vector<4x256xi32>
    %c16_i32_11 = arith.constant 16 : i32
    %44 = vector.broadcast %c16_i32_11 : i32 to vector<4x256xi32>
    %45 = arith.shrui %43, %44 : vector<4x256xi32>
    %46 = arith.xori %43, %45 : vector<4x256xi32>
    %c2146121005_i32_12 = arith.constant 2146121005 : i32
    %47 = vector.broadcast %c2146121005_i32_12 : i32 to vector<4x256xi32>
    %48 = arith.muli %46, %47 : vector<4x256xi32>
    %c15_i32_13 = arith.constant 15 : i32
    %49 = vector.broadcast %c15_i32_13 : i32 to vector<4x256xi32>
    %50 = arith.shrui %48, %49 : vector<4x256xi32>
    %51 = arith.xori %48, %50 : vector<4x256xi32>
    %c-2073254261_i32_14 = arith.constant -2073254261 : i32
    %52 = vector.broadcast %c-2073254261_i32_14 : i32 to vector<4x256xi32>
    %53 = arith.muli %51, %52 : vector<4x256xi32>
    %c16_i32_15 = arith.constant 16 : i32
    %54 = vector.broadcast %c16_i32_15 : i32 to vector<4x256xi32>
    %55 = arith.shrui %53, %54 : vector<4x256xi32>
    %56 = arith.xori %53, %55 : vector<4x256xi32>
    %c9_i32 = arith.constant 9 : i32
    %57 = vector.broadcast %c9_i32 : i32 to vector<4x256xi32>
    %58 = arith.shrui %41, %57 : vector<4x256xi32>
    %c1065353216_i32 = arith.constant 1065353216 : i32
    %59 = vector.broadcast %c1065353216_i32 : i32 to vector<4x256xi32>
    %60 = arith.ori %58, %59 : vector<4x256xi32>
    %61 = tpu.bitcast %60 : vector<4x256xi32> -> vector<4x256xf32>
    %cst = arith.constant 2.000000e+00 : f32
    %62 = vector.broadcast %cst : f32 to vector<4x256xf32>
    %63 = arith.subf %62, %61 : vector<4x256xf32>
    %c9_i32_16 = arith.constant 9 : i32
    %64 = vector.broadcast %c9_i32_16 : i32 to vector<4x256xi32>
    %65 = arith.shrui %56, %64 : vector<4x256xi32>
    %c1065353216_i32_17 = arith.constant 1065353216 : i32
    %66 = vector.broadcast %c1065353216_i32_17 : i32 to vector<4x256xi32>
    %67 = arith.ori %65, %66 : vector<4x256xi32>
    %68 = tpu.bitcast %67 : vector<4x256xi32> -> vector<4x256xf32>
    %cst_18 = arith.constant 1.000000e+00 : f32
    %69 = vector.broadcast %cst_18 : f32 to vector<4x256xf32>
    %70 = arith.subf %68, %69 : vector<4x256xf32>
    %71 = math.log %63 : vector<4x256xf32>
    %cst_19 = arith.constant -2.000000e+00 : f32
    %72 = vector.broadcast %cst_19 : f32 to vector<4x256xf32>
    %73 = arith.mulf %72, %71 : vector<4x256xf32>
    %74 = math.sqrt %73 : vector<4x256xf32>
    %cst_20 = arith.constant 6.28318548 : f32
    %75 = vector.broadcast %cst_20 : f32 to vector<4x256xf32>
    %76 = arith.mulf %75, %70 : vector<4x256xf32>
    %77 = math.cos %76 : vector<4x256xf32>
    %78 = arith.mulf %74, %77 : vector<4x256xf32>
    %79 = math.sin %76 : vector<4x256xf32>
    %80 = arith.mulf %74, %79 : vector<4x256xf32>
    %81 = tpu.concatenate %78, %80 in 1 : vector<4x256xf32>, vector<4x256xf32> -> vector<4x512xf32>
    %c0_21 = arith.constant 0 : index
    %c0_22 = arith.constant 0 : index
    %82 = vector.load %arg2[%c0_21, %c0_22] : memref<4x512xf32, #tpu.memory_space<vmem>>, vector<4x512xf32>
    %cst_23 = arith.constant 0.00999999977 : f32
    %83 = vector.broadcast %cst_23 : f32 to vector<4x512xf32>
    %84 = arith.mulf %81, %83 : vector<4x512xf32>
    %85 = arith.addf %82, %84 : vector<4x512xf32>
    %c0_24 = arith.constant 0 : index
    %c0_25 = arith.constant 0 : index
    %86 = vector.load %arg3[%c0_24, %c0_25] : memref<4x512xf32, #tpu.memory_space<vmem>>, vector<4x512xf32>
    tpu.vector_store %arg3[%c0_24, %c0_25], %85 {strides = array<i32>} : memref<4x512xf32, #tpu.memory_space<vmem>>, vector<4x512xf32>,
    return
  }
  func.func @transform_0(%arg0: i32, %arg1: memref<1xi32, #tpu.memory_space<smem>>) -> (i32, i32) {
    %c0_i32 = arith.constant 0 : i32
    %c0_i32_0 = arith.constant 0 : i32
    return %arg0, %c0_i32 : i32, i32
  }
  func.func @transform_1(%arg0: i32, %arg1: memref<1xi32, #tpu.memory_space<smem>>) -> (i32, i32) {
    %c0_i32 = arith.constant 0 : i32
    %c0_i32_0 = arith.constant 0 : i32
    return %arg0, %c0_i32 : i32, i32
  }
}

</mosaic_0001>

<bundles_post_ra>
// kernel: tpu_custom_call.1
= control target key start
LH: loop header
LB: loop body
LE: loop exit
PB: predicated region body
PF: predicated region fallthrough
CT: control target
= control target key end

     0   :  { %8 = vsyncpa [#allocation5], 0  ;;  %s1123_s0 = inlined_call_operand.<no memory space> [shape: s32[1], index: 0, kind: input, shape index: {}]   ;;  %s1124_s1 = inlined_call_operand.hbm [shape: f32[4,512], index: 1, kind: input, shape index: {}]   ;;  %s1125_s2 = inlined_call_operand.hbm [shape: f32[4,512], index: 2, kind: output, shape index: {}]  }
   0x1   :  { %9 = vsyncpa [#allocation6], 0  ;;  %s15_s11 = sshll.u32 %s1124_s1, 4  ;;  %s884_s12 = smov [#allocation4]   ;;  %s16_s11 = int_to_ptr.hbm [resolvable:$true] %s15_s11 }
   0x2   :  { %s17_s13 = sshll.u32 %s884_s12, 4  ;;  %s18_s13 = int_to_ptr.vmem [resolvable:$true] %s17_s13 }
   0x3   :  { %20 = dma.hbm_to_vmem [thread:$0]  %s16_s11, 256, %s18_s13, [#allocation5]  }
   0x4   :  { %880 = dma.done.wait [#allocation5], 256  }
   0x5   :  { %881 = vsyncadd [#allocation5], 4294967040  ;;  %v25_v0 = vlaneseq  ;;  %s46_s16 = sadd.s32 1013904242, %s1123_s0  ;;  %s37_s20 = sadd.s32 2654435769, %s1123_s0 }
   0x6   :  { %s47_s17 = sshrl.u32 %s46_s16, 16  ;;  %s38_s22 = sshrl.u32 %s37_s20, 16  ;;  %v885_v60 = vmov 683565275   ;;  %v886_v62 = vmov 2475754826  }
   0x7   :  { %v26_v1 = vshrl.u32 %v25_v0, 7  ;;  %v28_v2 = vand.u32 127, %v25_v0  ;;  %s48_s1 = sxor.u32 %s47_s17, %s46_s16  ;;  %s39_s25 = sxor.u32 %s38_s22, %s37_s20  ;;  %v887_v0 = vmov 2131351028  }
   0x8   :  { %s49_s21 = smul.u32 2146121005, %s48_s1  ;;  %s892_s6 = smov [#allocation7]  }
   0x9   :  { %v29_v3 = vadd.s32 128, %v28_v2  ;;  %v33_v4 = vmul.u32 256, %v26_v1  ;;  %s40_s28 = smul.u32 2146121005, %s39_s25  ;;  %s789_s7 = sshll.u32 %s892_s6, 4  ;;  %s790_s7 = int_to_ptr.vmem [resolvable:$true] %s789_s7 }
   0xa   :  { %s50_s23 = sshrl.u32 %s49_s21, 15  ;;  %s791_s10 = sshll.u32 %s1125_s2, 4  ;;  %s792_s10 = int_to_ptr.hbm [resolvable:$true] %s791_s10 }
   0xb   :  { %s51_s24 = sxor.u32 %s50_s23, %s49_s21  ;;  %v34_v5 = vadd.s32 %v33_v4, %v28_v2  ;;  %v35_v6 = vadd.s32 %v33_v4, %v29_v3  ;;  %s41_s30 = sshrl.u32 %s40_s28, 15  ;;  %v888_v2 = vmov 2102212464   ;;  %v889_v4 = vmov 920167782  }
   0xc   :  { %s52_s26 = smul.u32 2221713035, %s51_s24  ;;  %s42_s0 = sxor.u32 %s41_s30, %s40_s28 }
   0xd   :  { %s43_s3 = smul.u32 2221713035, %s42_s0 }
   0xe   :  { %s53_s27 = sshrl.u32 %s52_s26, 16 }
   0xf   :  { %s54_s29 = sxor.u32 %s53_s27, %s52_s26  ;;  %s44_s4 = sshrl.u32 %s43_s3, 16 }
  0x10   :  { %v74_v7 = vstv %s54_s29  ;;  %s45_s5 = sxor.u32 %s44_s4, %s43_s3 }
  0x11   :  { %v75_v8 = vxor.u32 %v74_v7, %v34_v5  ;;  %v76_v9 = vxor.u32 %v74_v7, %v35_v6  ;;  %v55_v26 = vstv %s45_s5 }
  0x12   :  { %v56_v29 = vxor.u32 %v55_v26, %v34_v5  ;;  %v57_v32 = vxor.u32 %v55_v26, %v35_v6 }
  0x13   :  { %v77_v10 = vshrl.u32 %v75_v8, 16  ;;  %v78_v11 = vshrl.u32 %v76_v9, 16 }
  0x14   :  { %v58_v35 = vshrl.u32 %v56_v29, 16  ;;  %v59_v38 = vshrl.u32 %v57_v32, 16 }
  0x15   :  { %v79_v12 = vxor.u32 %v77_v10, %v75_v8  ;;  %v80_v13 = vxor.u32 %v78_v11, %v76_v9 }
  0x16   :  { %v60_v40 = vxor.u32 %v58_v35, %v56_v29  ;;  %v61_v43 = vxor.u32 %v59_v38, %v57_v32 }
  0x17   :  { %v81_v14 = vmul.u32 2146121005, %v79_v12  ;;  %v82_v15 = vmul.u32 2146121005, %v80_v13  ;;  %v890_v12 = vmov 1326507024  }
  0x18   :  { %v62_v45 = vmul.u32 2146121005, %v60_v40  ;;  %v63_v49 = vmul.u32 2146121005, %v61_v43 }
  0x19   :  { %v83_v16 = vshrl.u32 %v81_v14, 15  ;;  %v84_v17 = vshrl.u32 %v82_v15, 15 }
  0x1a   :  { %v64_v50 = vshrl.u32 %v62_v45, 15  ;;  %v65_v54 = vshrl.u32 %v63_v49, 15 }
  0x1b   :  { %v85_v18 = vxor.u32 %v83_v16, %v81_v14  ;;  %v86_v19 = vxor.u32 %v84_v17, %v82_v15 }
  0x1c   :  { %v926_v56 = vxor.u32 %v64_v50, %v62_v45  ;;  %v933_v7 = vxor.u32 %v65_v54, %v63_v49 }
  0x1d   :  { %v87_v20 = vmul.u32 2221713035, %v85_v18  ;;  %v88_v21 = vmul.u32 2221713035, %v86_v19 }
  0x1f   :  { %v89_v22 = vshrl.u32 %v87_v20, 16  ;;  %v90_v23 = vshrl.u32 %v88_v21, 16 }
  0x21   :  { %v91_v24 = vxor.u32 %v89_v22, %v87_v20  ;;  %v92_v25 = vxor.u32 %v90_v23, %v88_v21  ;;  %v68_v21 = vmul.u32 2221713035, %v926_v56 }
  0x23   :  { %v101_v27 = vshrl.u32 %v91_v24, 9  ;;  %v102_v28 = vshrl.u32 %v92_v25, 9 }
  0x25   :  { %v103_v30 = vor.u32 1065353216, %v101_v27  ;;  %v104_v31 = vor.u32 1065353216, %v102_v28 }
  0x27   :  { %v801_v33 = vadd.f32 -1.0, %v103_v30  ;;  %v802_v34 = vadd.f32 -1.0, %v104_v31 }
  0x29   :  { %v917_v36 = vmul.f32 6.2831855, %v801_v33  ;;  %v919_v37 = vmul.f32 6.2831855, %v802_v34  ;;  %v69_v34 = vmul.u32 2221713035, %v933_v7 }
  0x2b   :  { %v144_v39 = vand.u32 2139095040, %v917_v36  ;;  %v298_v42 = vand.u32 2139095040, %v919_v37  ;;  %v141_v46 = vand.u32 2147483647, %v917_v36  ;;  %v295_v14 = vand.u32 2147483647, %v919_v37 }
  0x2d   :  { %v145_v41 = vshrl.u32 %v144_v39, 23  ;;  %v299_v48 = vshrl.u32 %v298_v42, 23  ;;  %v148_v51 = vand.u32 8388607, %v141_v46  ;;  %v948_v25 = vand.u32 8388607, %v295_v14 }
  0x2f   :  { %v803_v44 = vadd.s32 4294967169, %v145_v41  ;;  %v806_v53 = vadd.s32 4294967169, %v299_v48  ;;  %v149_v57 = vor.u32 8388608, %v148_v51  ;;  %v303_v51 = vor.u32 8388608, %v948_v25 }
  0x31   :  { %v151_v47 = vadd.s32 1, %v803_v44  ;;  %v305_v6 = vadd.s32 1, %v806_v53  ;;  %v941_v17 = vshll.u32 %v149_v57, 8  ;;  %v962_v44 = vshrl.u32 %v68_v21, 16 }
  0x33   :  { %vm152_vm0 = vcmp.gt.s32.totalorder %v151_v47, 0  ;;  %vm306_vm2 = vcmp.gt.s32.totalorder %v305_v6, 0  ;;  %v190_v32 = vand.u32 65535, %v941_v17  ;;  %v191_v33 = vshrl.u32 %v941_v17, 16 }
  0x34   :  { %v153_v52 = vsel %vm152_vm0, %v151_v47, 0  ;;  %v307_v29 = vsel %vm306_vm2, %v305_v6, 0 }
  0x35   :  { %v155_v55 = vand.u32 31, %v153_v52  ;;  %v154_v58 = vshrl.u32 %v153_v52, 5  ;;  %v309_v43 = vand.u32 31, %v307_v29 }
  0x37   :  { %v156_v59 = vsub.s32 32, %v155_v55  ;;  %v158_v61 = vshll.u32 %v885_v60, %v155_v55  ;;  %v161_v63 = vshll.u32 %v886_v62, %v155_v55  ;;  %v164_v1 = vshll.u32 %v887_v0, %v155_v55 }
  0x38   :  { %v167_v3 = vshll.u32 %v888_v2, %v155_v55  ;;  %v170_v5 = vshll.u32 %v889_v4, %v155_v55  ;;  %vm173_vm1 = vcmp.lt.s32.totalorder %v154_v58, 1  ;;  %vm174_vm3 = vcmp.lt.s32.totalorder %v154_v58, 2 }
  0x39   :  { %v159_v8 = vshrl.u32 %v886_v62, %v156_v59  ;;  %v162_v9 = vshrl.u32 %v887_v0, %v156_v59  ;;  %v165_v10 = vshrl.u32 %v888_v2, %v156_v59  ;;  %v168_v11 = vshrl.u32 %v889_v4, %v156_v59 }
  0x3a   :  { %v171_v13 = vshrl.u32 %v890_v12, %v156_v59  ;;  %vm175_vm4 = vcmp.lt.s32.totalorder %v154_v58, 3  ;;  %vm176_vm5 = vcmp.lt.s32.totalorder %v154_v58, 4  ;;  %v157_v22 = vshrl.u32 %v885_v60, %v156_v59 }
  0x3b   :  { %v160_v15 = vor.u32 %v159_v8, %v158_v61  ;;  %v163_v16 = vor.u32 %v162_v9, %v161_v63  ;;  %v166_v18 = vor.u32 %v165_v10, %v164_v1  ;;  %v169_v19 = vor.u32 %v168_v11, %v167_v3 }
  0x3c   :  { %v172_v20 = vor.u32 %v171_v13, %v170_v5  ;;  %v968_v55 = vshrl.u32 %v307_v29, 5  ;;  %v970_v63 = vsub.s32 32, %v309_v43  ;;  %v891_v11 = vmov 0  }
  0x3d   :  { %v181_v23 = vsel %vm173_vm1, %v160_v15, %v163_v16  ;;  %v182_v24 = vsel %vm176_vm5, %v169_v19, 920167782  ;;  %v178_v26 = vsel %vm176_vm5, %v166_v18, 2102212464  ;;  %v185_v28 = vsel %vm173_vm1, %v163_v16, %v166_v18 }
  0x3e   :  { %v183_v27 = vsel %vm175_vm4, %v166_v18, %v182_v24  ;;  %v186_v31 = vsel %vm176_vm5, %v172_v20, 1326507024  ;;  %v177_v40 = vsel %vm173_vm1, %v157_v22, %v160_v15  ;;  %v179_v41 = vsel %vm175_vm4, %v163_v16, %v178_v26 }
  0x3f   :  { %v184_v30 = vsel %vm174_vm3, %v181_v23, %v183_v27  ;;  %v187_v35 = vsel %vm175_vm4, %v169_v19, %v186_v31  ;;  %v966_v52 = vsel %vm174_vm3, %v177_v40, %v179_v41  ;;  %v312_v20 = vshll.u32 %v885_v60, %v309_v43 }
  0x40   :  { %v214_v38 = vand.u32 65535, %v184_v30  ;;  %v215_v39 = vshrl.u32 %v184_v30, 16  ;;  %v188_v42 = vsel %vm174_vm3, %v185_v28, %v187_v35  ;;  %v313_v26 = vshrl.u32 %v886_v62, %v970_v63 }
  0x41   :  { %v192_v45 = vand.u32 65535, %v188_v42  ;;  %v193_v47 = vshrl.u32 %v188_v42, 16  ;;  %v315_v27 = vshll.u32 %v886_v62, %v309_v43  ;;  %v316_v30 = vshrl.u32 %v887_v0, %v970_v63 }
  0x42   :  { %v216_v48 = vmul.u32 %v214_v38, %v190_v32  ;;  %v217_v49 = vmul.u32 %v215_v39, %v190_v32  ;;  %v218_v50 = vmul.u32 %v214_v38, %v191_v33  ;;  %v219_v59 = vmul.u32 %v215_v39, %v191_v33 }
  0x43   :  { %v194_v53 = vmul.u32 %v192_v45, %v190_v32  ;;  %v195_v54 = vmul.u32 %v193_v47, %v190_v32  ;;  %v196_v57 = vmul.u32 %v192_v45, %v191_v33  ;;  %v197_v1 = vmul.u32 %v193_v47, %v191_v33 }
  0x44   :  { %v220_v61 = vshll.u32 %v217_v49, 16  ;;  %v222_v6 = vshll.u32 %v218_v50, 16  ;;  %v221_v10 = vshrl.u32 %v217_v49, 16  ;;  %v223_v18 = vshrl.u32 %v218_v50, 16 }
  0x45   :  { %v198_v3 = vshll.u32 %v195_v54, 16  ;;  %v199_v5 = vshrl.u32 %v195_v54, 16  ;;  %v200_v8 = vshll.u32 %v196_v57, 16  ;;  %v201_v9 = vshrl.u32 %v196_v57, 16 }
  0x46   :  { %vm224_vm6 = vc.u32 %v216_v48, %v220_v61  ;;  %v226_v15 = vadd.s32 %v220_v61, %v216_v48  ;;  %v318_v31 = vshll.u32 %v887_v0, %v309_v43  ;;  %v985_v32 = vor.u32 %v313_v26, %v312_v20 }
  0x47   :  { %vm202_vm7 = vc.u32 %v194_v53, %v198_v3  ;;  %v204_v58 = vadd.s32 %v198_v3, %v194_v53  ;;  %v225_v13 = vsel %vm224_vm6, 1, %v891_v11  ;;  %v319_v33 = vshrl.u32 %v888_v2, %v970_v63 }
  0x48   :  { %v203_v16 = vsel %vm202_vm7, 1, %v891_v11  ;;  %v227_v19 = vadd.s32 %v225_v13, %v219_v59  ;;  %vm228_vm9 = vc.u32 %v226_v15, %v222_v6  ;;  %v975_v23 = vadd.s32 %v226_v15, %v222_v6 }
  0x49   :  { %v205_v22 = vadd.s32 %v203_v16, %v197_v1  ;;  %vm206_vm8 = vc.u32 %v204_v58, %v200_v8  ;;  %v229_v25 = vsel %vm228_vm9, 1, %v891_v11  ;;  %v321_v35 = vshll.u32 %v888_v2, %v309_v43 }
  0x4a   :  { %v207_v24 = vsel %vm206_vm8, 1, %v891_v11  ;;  %v231_v29 = vadd.s32 %v229_v25, %v227_v19  ;;  %v322_v38 = vshrl.u32 %v889_v4, %v970_v63  ;;  %v992_v62 = vor.u32 %v316_v30, %v315_v27 }
  0x4b   :  { %v209_v28 = vadd.s32 %v207_v24, %v205_v22  ;;  %v324_v41 = vshll.u32 %v889_v4, %v309_v43  ;;  %v71_v42 = vshrl.u32 %v69_v34, 16  ;;  %v325_v45 = vshrl.u32 %v890_v12, %v970_v63 }
  0x4c   :  { %v232_v40 = vadd.s32 %v231_v29, %v221_v10  ;;  %v323_v0 = vor.u32 %v322_v38, %v321_v35  ;;  %vm327_vm10 = vcmp.lt.s32.totalorder %v968_v55, 1  ;;  %v1002_v48 = vor.u32 %v319_v33, %v318_v31 }
  0x4d   :  { %v210_v39 = vadd.s32 %v209_v28, %v199_v5  ;;  %v1004_v49 = vshll.u32 %v303_v51, 8  ;;  %v234_v50 = vmul.u32 %v941_v17, %v966_v52  ;;  %v326_v4 = vor.u32 %v325_v45, %v324_v41 }
  0x4e   :  { %v233_v2 = vadd.s32 %v232_v40, %v223_v18  ;;  %vm329_vm11 = vcmp.lt.s32.totalorder %v968_v55, 3  ;;  %vm330_vm12 = vcmp.lt.s32.totalorder %v968_v55, 4  ;;  %vm328_vm14 = vcmp.lt.s32.totalorder %v968_v55, 2 }
  0x4f   :  { %v1000_v47 = vadd.s32 %v210_v39, %v201_v9  ;;  %v335_v43 = vsel %vm327_vm10, %v985_v32, %v992_v62  ;;  %v72_v17 = vxor.u32 %v962_v44, %v68_v21  ;;  %v336_v51 = vsel %vm330_vm12, %v323_v0, 920167782 }
  0x50   :  { %v237_v12 = vadd.s32 1, %v233_v2  ;;  %v73_v52 = vxor.u32 %v71_v42, %v69_v34  ;;  %v337_v54 = vsel %vm329_vm11, %v1002_v48, %v336_v51  ;;  %v339_v57 = vsel %vm327_vm10, %v992_v62, %v1002_v48 }
  0x51   :  { %vm236_vm13 = vc.u32 %v1000_v47, %v975_v23  ;;  %v338_v56 = vsel %vm328_vm14, %v335_v43, %v337_v54  ;;  %v340_v21 = vsel %vm330_vm12, %v326_v4, 1326507024  ;;  %v344_v7 = vand.u32 65535, %v1004_v49 }
  0x52   :  { %v238_v53 = vsel %vm236_vm13, %v237_v12, %v233_v2  ;;  %v341_v34 = vsel %vm329_vm11, %v323_v0, %v340_v21  ;;  %v345_v44 = vshrl.u32 %v1004_v49, 16  ;;  %v368_v61 = vand.u32 65535, %v338_v56 }
  0x53   :  { %v239_v59 = vadd.s32 %v238_v53, %v234_v50  ;;  %v369_v1 = vshrl.u32 %v338_v56, 16  ;;  %v93_v3 = vshrl.u32 %v72_v17, 9  ;;  %v342_v6 = vsel %vm328_vm14, %v339_v57, %v341_v34 }
  0x54   :  { %v346_v8 = vand.u32 65535, %v342_v6  ;;  %v347_v9 = vshrl.u32 %v342_v6, 16  ;;  %v94_v58 = vshrl.u32 %v73_v52, 9  ;;  %v370_v15 = vmul.u32 %v368_v61, %v344_v7 }
  0x55   :  { %v240_v5 = vadd.s32 536870912, %v239_v59  ;;  %v371_v10 = vmul.u32 %v369_v1, %v344_v7  ;;  %v372_v20 = vmul.u32 %v368_v61, %v345_v44  ;;  %v95_v22 = vor.u32 1065353216, %v93_v3 }
  0x56   :  { %v348_v16 = vmul.u32 %v346_v8, %v344_v7  ;;  %v349_v18 = vmul.u32 %v347_v9, %v344_v7  ;;  %v350_v19 = vmul.u32 %v346_v8, %v345_v44  ;;  %v351_v26 = vmul.u32 %v347_v9, %v345_v44 }
  0x57   :  { %v1041_v13 = vshrl.u32 %v240_v5, 30  ;;  %v374_v25 = vshll.u32 %v371_v10, 16  ;;  %v373_v29 = vmul.u32 %v369_v1, %v345_v44  ;;  %v96_v30 = vor.u32 1065353216, %v94_v58 }
  0x58   :  { %v352_v27 = vshll.u32 %v349_v18, 16  ;;  %v354_v28 = vshll.u32 %v350_v19, 16  ;;  %v311_v33 = vshrl.u32 %v885_v60, %v970_v63  ;;  %v353_v35 = vshrl.u32 %v349_v18, 16 }
  0x59   :  { %v242_v24 = vshll.u32 %v1041_v13, 30  ;;  %v376_v39 = vshll.u32 %v372_v20, 16  ;;  %vm378_vm0 = vc.u32 %v370_v15, %v374_v25  ;;  %v380_v45 = vadd.s32 %v374_v25, %v370_v15 }
  0x5a   :  { %vm356_vm15 = vc.u32 %v348_v16, %v352_v27  ;;  %v358_v38 = vadd.s32 %v352_v27, %v348_v16  ;;  %v379_v42 = vsel %vm378_vm0, 1, %v891_v11  ;;  %v99_v50 = vsub.f32 2.0, %v95_v22 }
  0x5b   :  { %v243_v31 = vsub.s32 %v239_v59, %v242_v24  ;;  %v357_v41 = vsel %vm356_vm15, 1, %v891_v11  ;;  %v381_v2 = vadd.s32 %v379_v42, %v373_v29  ;;  %v332_v60 = vsel %vm330_vm12, %v1002_v48, 2102212464 }
  0x5c   :  { %v359_v0 = vadd.s32 %v357_v41, %v351_v26  ;;  %vm360_vm2 = vc.u32 %v358_v38, %v354_v28  ;;  %v355_v43 = vshrl.u32 %v350_v19, 16  ;;  %vm382_vm3 = vc.u32 %v380_v45, %v376_v39 }
  0x5d   :  { %vm244_vm1 = vcmp.lt.s32.totalorder %v243_v31, 0  ;;  %v245_v40 = vsub.s32 0, %v243_v31  ;;  %v361_v63 = vsel %vm360_vm2, 1, %v891_v11  ;;  %v331_v51 = vsel %vm327_vm10, %v311_v33, %v985_v32 }
  0x5e   :  { %v363_v17 = vadd.s32 %v361_v63, %v359_v0  ;;  %v375_v52 = vshrl.u32 %v371_v10, 16  ;;  %v383_v53 = vsel %vm382_vm3, 1, %v891_v11  ;;  %v333_v57 = vsel %vm329_vm11, %v992_v62, %v332_v60 }
  0x5f   :  { %v246_v4 = vsel %vm244_vm1, %v245_v40, %v243_v31  ;;  %v385_v48 = vadd.s32 %v383_v53, %v381_v2  ;;  %v100_v56 = vsub.f32 2.0, %v96_v30  ;;  %824 = vlog2.f32 %v99_v50 }
  0x60   :  { %v247_v12 = vclz %v246_v4  ;;  %v364_v59 = vadd.s32 %v363_v17, %v353_v35  ;;  %v377_v21 = vshrl.u32 %v372_v20, 16  ;;  %v235_v7 = vadd.s32 %v975_v23, %v1000_v47 }
  0x61   :  { %v384_v44 = vadd.s32 %v380_v45, %v376_v39  ;;  %v334_v11 = vsel %vm328_vm14, %v331_v51, %v333_v57  ;;  %v386_v61 = vadd.s32 %v385_v48, %v375_v52  ;;  %826 = vlog2.f32 %v100_v56 }
  0x62   :  { %v804_v54 = vadd.s32 4294967294, %v247_v12  ;;  %v365_v34 = vadd.s32 %v364_v59, %v355_v43  ;;  %v388_v9 = vmul.u32 %v1004_v49, %v334_v11  ;;  %vm143_vm6 = vcmp.lt.s32.totalorder %v917_v36, 0 }
  0x63   :  { %v387_v62 = vadd.s32 %v386_v61, %v377_v21  ;;  %vm1071_vm7 = vcmp.le.f32.partialorder %v141_v46, 0.7853982  ;;  %vm297_vm10 = vcmp.lt.s32.totalorder %v919_v37, 0  ;;  %vm296_vm11 = vcmp.le.f32.partialorder %v295_v14, 0.7853982 }
  0x64   :  { %vm805_vm4 = vcmp.lt.s32.totalorder %v804_v54, 0  ;;  %vm390_vm5 = vc.u32 %v365_v34, %v384_v44  ;;  %v389_v4 = vadd.s32 %v384_v44, %v365_v34 }
  0x65   :  { %v250_v32 = vsel %vm805_vm4, 0, %v804_v54  ;;  %v825_v10 = vpop.eup %824  ;;  %v391_v23 = vadd.s32 1, %v387_v62 }
  0x66   :  { %v251_v1 = vsub.s32 32, %v250_v32  ;;  %v252_v3 = vshll.u32 %v243_v31, %v250_v32  ;;  %v255_v5 = vsub.s32 4294967266, %v250_v32  ;;  %v110_v20 = vmul.f32 0.6931472, %v825_v10 }
  0x67   :  { %v392_v15 = vsel %vm390_vm5, %v391_v23, %v387_v62  ;;  %v827_v19 = vpop.eup %826 }
  0x68   :  { %v253_v6 = vshrl.u32 %v235_v7, %v251_v1  ;;  %v256_v8 = vadd.s32 127, %v255_v5  ;;  %v393_v55 = vadd.s32 %v392_v15, %v388_v9  ;;  %v112_v25 = vmul.f32 0.6931472, %v827_v19 }
  0x69   :  { %v1066_v28 = vmul.f32 -2.0, %v110_v20  ;;  %v265_v7 = vsub.s32 4, %v1041_v13 }
  0x6a   :  { %v254_v47 = vor.u32 %v253_v6, %v252_v3  ;;  %v257_v58 = vshll.u32 %v256_v8, 23  ;;  %v394_v24 = vadd.s32 536870912, %v393_v55  ;;  %v1076_v31 = vmul.f32 -2.0, %v112_v25 }
  0x6b   :  { %828 = vrsqrt.f32 %v1066_v28  ;;  %v266_v5 = vsel %vm143_vm6, %v265_v7, %v1041_v13  ;;  %vm122_vm12 = vcmp.eq.f32.partialorder %v1066_v28, inf  ;;  %vm124_vm13 = vcmp.eq.f32.partialorder %v1066_v28, 0.0 }
  0x6c   :  { %v258_v16 = vor.u32 4788187, %v257_v58  ;;  %v261_v18 = vcvt.s32.f32 %v254_v47  ;;  %v1064_v27 = vshrl.u32 %v394_v24, 30  ;;  %830 = vrsqrt.f32 %v1076_v31 }
  0x6d   :  { %v268_v47 = vsel %vm1071_vm7, 0, %v266_v5  ;;  %vm134_vm4 = vcmp.eq.f32.partialorder %v1076_v31, inf  ;;  %vm136_vm5 = vcmp.eq.f32.partialorder %v1076_v31, 0.0 }
  0x6e   :  { %v259_v22 = vand.u32 2147483647, %v258_v16  ;;  %v396_v30 = vshll.u32 %v1064_v27, 30  ;;  %v419_v23 = vsub.s32 4, %v1064_v27 }
  0x70   :  { %v262_v26 = vmul.f32 %v261_v18, %v259_v22  ;;  %v397_v35 = vsub.s32 %v393_v55, %v396_v30  ;;  %v420_v19 = vsel %vm297_vm10, %v419_v23, %v1064_v27  ;;  %v595_v22 = vadd.s32 3, %v268_v47 }
  0x71   :  { %v829_v0 = vpop.eup %828  ;;  %v422_v49 = vsel %vm296_vm11, 0, %v420_v19  ;;  %v763_v19 = vld [vmem:[#allocation4] sm:$0xff] }
  0x72   :  { %v263_v29 = vxor.u32 2147483648, %v262_v26  ;;  %vm398_vm8 = vcmp.lt.s32.totalorder %v397_v35, 0  ;;  %v399_v46 = vsub.s32 0, %v397_v35  ;;  %v831_v60 = vpop.eup %830  ;;  %v116_v63 = vmul.f32 %v829_v0, %v1066_v28 }
  0x73   :  { %v128_v54 = vmul.f32 %v831_v60, %v1076_v31 }
  0x74   :  { %v264_v33 = vsel %vm143_vm6, %v263_v29, %v262_v26  ;;  %v400_v41 = vsel %vm398_vm8, %v399_v46, %v397_v35  ;;  %v117_v48 = vmul.f32 %v829_v0, %v116_v63  ;;  %v285_v29 = vand.u32 3, %v268_v47 }
  0x75   :  { %v267_v38 = vsel %vm1071_vm7, %v917_v36, %v264_v33  ;;  %v401_v42 = vclz %v400_v41  ;;  %v129_v32 = vmul.f32 %v831_v60, %v128_v54  ;;  %v439_v63 = vand.u32 3, %v422_v49 }
  0x76   :  { %v269_v39 = vmul.f32 %v267_v38, %v267_v38  ;;  %v118_v1 = vmul.f32 0.5, %v117_v48  ;;  %vm287_vm14 = vcmp.eq.s32.totalorder %v285_v29, 0  ;;  %vm290_vm15 = vcmp.eq.s32.totalorder %v285_v29, 2 }
  0x77   :  { %v807_v45 = vadd.s32 4294967294, %v401_v42  ;;  %v130_v8 = vmul.f32 0.5, %v129_v32  ;;  %vm286_vm2 = vcmp.lt.s32.totalorder %v285_v29, 2  ;;  %vm284_vm6 = vweird.f32 %v917_v36 }
  0x78   :  { %v277_v40 = vmul.f32 -0.00019511016, %v269_v39  ;;  %v270_v2 = vmul.f32 -0.001358992, %v269_v39  ;;  %v119_v10 = vsub.f32 1.5, %v118_v1  ;;  %vm444_vm7 = vcmp.eq.s32.totalorder %v439_v63, 2 }
  0x79   :  { %vm808_vm9 = vcmp.lt.s32.totalorder %v807_v45, 0  ;;  %v131_v18 = vsub.f32 1.5, %v130_v8 }
  0x7a   :  { %v278_v50 = vadd.f32 0.008332121, %v277_v40  ;;  %v404_v12 = vsel %vm808_vm9, 0, %v807_v45  ;;  %v271_v52 = vadd.f32 0.041655596, %v270_v2  ;;  %v120_v55 = vmul.f32 %v829_v0, %v119_v10 }
  0x7b   :  { %v405_v43 = vsub.s32 32, %v404_v12  ;;  %v406_v17 = vshll.u32 %v397_v35, %v404_v12  ;;  %v409_v51 = vsub.s32 4294967266, %v404_v12  ;;  %v132_v35 = vmul.f32 %v831_v60, %v131_v18 }
  0x7c   :  { %v279_v53 = vmul.f32 %v278_v50, %v269_v39  ;;  %v272_v34 = vmul.f32 %v271_v52, %v269_v39  ;;  %v121_v14 = vmul.f32 %v120_v55, %v1066_v28  ;;  %v125_v40 = vand.u32 2147483648, %v1066_v28 }
  0x7d   :  { %v407_v57 = vshrl.u32 %v389_v4, %v405_v43  ;;  %v410_v59 = vadd.s32 127, %v409_v51  ;;  %v750_v0 = vadd.s32 3, %v422_v49  ;;  %v133_v50 = vmul.f32 %v132_v35, %v1076_v31 }
  0x7e   :  { %v280_v44 = vadd.f32 -0.16666654, %v279_v53  ;;  %v273_v62 = vadd.f32 -0.4999988, %v272_v34  ;;  %v123_v2 = vsel %vm122_vm12, %v1066_v28, %v121_v14  ;;  %vm440_vm9 = vcmp.lt.s32.totalorder %v439_v63, 2 }
  0x7f   :  { %v408_v56 = vor.u32 %v407_v57, %v406_v17  ;;  %v411_v21 = vshll.u32 %v410_v59, 23  ;;  %v751_v17 = vand.u32 3, %v750_v0  ;;  %v137_v57 = vand.u32 2147483648, %v1076_v31 }
  0x80   :  { %v281_v6 = vmul.f32 %v280_v44, %v269_v39  ;;  %v274_v15 = vmul.f32 %v273_v62, %v269_v39  ;;  %v596_v39 = vand.u32 3, %v595_v22  ;;  %v135_v34 = vsel %vm134_vm4, %v1076_v31, %v133_v50 }
  0x81   :  { %v412_v11 = vor.u32 4788187, %v411_v21  ;;  %v415_v61 = vcvt.s32.f32 %v408_v56  ;;  %v126_v21 = vsel %vm124_vm13, %v125_v40, %v123_v2  ;;  %vm756_vm8 = vcmp.eq.s32.totalorder %v751_v17, 2 }
  0x82   :  { %v282_v16 = vadd.f32 1.0, %v281_v6  ;;  %v275_v25 = vadd.f32 1.0, %v274_v15  ;;  %vm598_vm0 = vcmp.eq.s32.totalorder %v596_v39, 0  ;;  %vm601_vm1 = vcmp.eq.s32.totalorder %v596_v39, 2 }
  0x83   :  { %v413_v3 = vand.u32 2147483647, %v412_v11  ;;  %vm597_vm3 = vcmp.lt.s32.totalorder %v596_v39, 2  ;;  %vm753_vm12 = vcmp.eq.s32.totalorder %v751_v17, 0  ;;  %vm438_vm13 = vweird.f32 %v919_v37 }
  0x84   :  { %v283_v26 = vmul.f32 %v282_v16, %v267_v38  ;;  %v291_v42 = vxor.u32 2147483648, %v275_v25  ;;  %v138_v5 = vsel %vm136_vm5, %v137_v57, %v135_v34 }
  0x85   :  { %v416_v9 = vmul.f32 %v415_v61, %v413_v3 }
  0x86   :  { %v288_v41 = vxor.u32 2147483648, %v283_v26  ;;  %v292_v43 = vsel %vm290_vm15, %v291_v42, %v283_v26  ;;  %v603_v54 = vsel %vm601_vm1, %v291_v42, %v283_v26 }
  0x87   :  { %v417_v58 = vxor.u32 2147483648, %v416_v9 }
  0x88   :  { %v289_v12 = vsel %vm287_vm14, %v275_v25, %v288_v41  ;;  %v600_v53 = vsel %vm598_vm0, %v275_v25, %v288_v41  ;;  %vm775_vm14 = vcmask 1043456  }
  0x89   :  { %v418_v13 = vsel %vm297_vm10, %v417_v58, %v416_v9  ;;  %v293_v59 = vsel %vm286_vm2, %v289_v12, %v292_v43  ;;  %v604_v7 = vsel %vm597_vm3, %v600_v53, %v603_v54  ;;  %vm441_vm10 = vcmp.eq.s32.totalorder %v439_v63, 0 }
  0x8a   :  { %v421_v20 = vsel %vm296_vm11, %v919_v37, %v418_v13  ;;  %v294_v11 = vsel %vm284_vm6, nan, %v293_v59  ;;  %vm752_vm11 = vcmp.lt.s32.totalorder %v751_v17, 2  ;;  %v605_v28 = vsel %vm284_vm6, nan, %v604_v7  ;;  %v764_v37 = vld [vmem:[#allocation4 + $0x8] sm:$0xff] }
  0x8b   :  { %v423_v24 = vmul.f32 %v421_v20, %v421_v20  ;;  %v449_v6 = vmul.f32 %v294_v11, %v126_v21  ;;  %v761_v23 = vmul.f32 %v605_v28, %v126_v21 }
  0x8d   :  { %v424_v30 = vmul.f32 -0.001358992, %v423_v24  ;;  %v431_v33 = vmul.f32 -0.00019511016, %v423_v24  ;;  %v765_v18 = vmul.f32 0.01, %v449_v6 }
  0x8e   :  { %v767_v36 = vmul.f32 0.01, %v761_v23 }
  0x8f   :  { %v425_v46 = vadd.f32 0.041655596, %v424_v30  ;;  %v432_v27 = vadd.f32 0.008332121, %v431_v33 }
  0x91   :  { %v426_v38 = vmul.f32 %v425_v46, %v423_v24  ;;  %v433_v45 = vmul.f32 %v432_v27, %v423_v24 }
  0x93   :  { %v427_v4 = vadd.f32 -0.4999988, %v426_v38  ;;  %v434_v60 = vadd.f32 -0.16666654, %v433_v45 }
  0x95   :  { %v428_v51 = vmul.f32 %v427_v4, %v423_v24  ;;  %v435_v52 = vmul.f32 %v434_v60, %v423_v24 }
  0x97   :  { %v429_v48 = vadd.f32 1.0, %v428_v51  ;;  %v436_v56 = vadd.f32 1.0, %v435_v52 }
  0x99   :  { %v437_v44 = vmul.f32 %v436_v56, %v421_v20  ;;  %v445_v32 = vxor.u32 2147483648, %v429_v48 }
  0x9b   :  { %v442_v61 = vxor.u32 2147483648, %v437_v44  ;;  %v446_v1 = vsel %vm444_vm7, %v445_v32, %v437_v44  ;;  %v758_v3 = vsel %vm756_vm8, %v445_v32, %v437_v44 }
  0x9d   :  { %v443_v62 = vsel %vm441_vm10, %v429_v48, %v442_v61  ;;  %v755_v8 = vsel %vm753_vm12, %v429_v48, %v442_v61 }
  0x9e   :  { %v447_v9 = vsel %vm440_vm9, %v443_v62, %v446_v1  ;;  %v759_v10 = vsel %vm752_vm11, %v755_v8, %v758_v3 }
  0x9f   :  { %v448_v47 = vsel %vm438_vm13, nan, %v447_v9  ;;  %v760_v58 = vsel %vm438_vm13, nan, %v759_v10 }
  0xa0   :  { %v450_v15 = vmul.f32 %v448_v47, %v138_v5  ;;  %v762_v16 = vmul.f32 %v760_v58, %v138_v5 }
  0xa2   :  { %v766_v13 = vmul.f32 0.01, %v450_v15  ;;  %v768_v55 = vmul.f32 0.01, %v762_v16 }
  0xa4   :  { %v773_v20 = vrot.slane %v766_v13, 4  ;;  %v774_v31 = vrot.slane %v768_v55, 4 }
  0xa6   :  { %v776_v22 = vsel %vm775_vm14, %v765_v18, %v773_v20  ;;  %v777_v24 = vsel %vm775_vm14, %v767_v36, %v774_v31 }
  0xa7   :  { %v780_v25 = vadd.f32 %v776_v22, %v763_v19  ;;  %v781_v26 = vadd.f32 %v777_v24, %v764_v37 }
  0xa9   :  { %782 = vst [vmem:[#allocation7] sm:$0xff] %v780_v25 }
  0xaa   :  { %783 = vst [vmem:[#allocation7 + $0x8] sm:$0xff] %v781_v26 }
  0xab   :  { %794 = dma.vmem_to_hbm [thread:$0]  %s790_s7, 256, %s792_s10, [#allocation6]  }
  0xac   :  { %882 = dma.done.wait [#allocation6], 256  }
  0xad   :  { %883 = vsyncadd [#allocation6], 4294967040 }
  0xae   :  { %799 = vsyncpa [#allocation5], 1 }
  0xaf   :  { %800 = vsyncpa [#allocation6], 1 }

</bundles_post_ra>
